<compile_context>
chip_gen: v7x
topology: tpu7x:2x2x1
jax: 0.10.0
libtpu: 0.0.40
codegen_flags: <defaults>
</compile_context>

<pallas_src>
import functools

import jax
import jax.numpy as jnp
from jax.experimental import pallas as pl
from jax.experimental.pallas import tpu as pltpu


_LANE = 128
_PER_BUFFER_CAP = 32 * 1024 * 1024  # soft cap on a single input buffer


def _round_up(a, b):
    return ((a + b - 1) // b) * b


def _sublane_multiple(dtype):
    # Native sublane tile grows as the dtype narrows: 8 (f32), 16 (bf16), 32 (i8).
    return max(8, 32 // jnp.dtype(dtype).itemsize)


def _vmem_limit_bytes():
    """Scoped VMEM limit: ~3/4 of physical per-core VMEM (48 MiB on v7x,
    96 MiB on v5e/v6e), leaving headroom for compiler-internal scratch."""
    cap = 0
    try:
        cap = int(getattr(pltpu.get_tpu_info(), "vmem_capacity_bytes", 0))
    except Exception:
        cap = 0
    if cap <= 0:
        cap = 64 * 1024 * 1024  # conservative (v7x-sized) fallback
    return (cap // 4) * 3


def _choose_tiling(total, hw, itemsize, sub, vmem_limit):
    """Pick (tr, thw): rows per block and hw-chunk width (thw == hw when one
    full image row fits per block).  All sizes are VMEM-padding aware."""
    padded_hw = _round_up(hw, _LANE)
    budget = int(vmem_limit * 0.85)               # pipeline / compiler headroom
    min_rows = _round_up(min(total, sub), sub)

    # Full-width path: 2x (tr, padded_hw) input buffers + 2x lane-padded
    # (tr, 128) output buffers.
    full_row_bytes = padded_hw * itemsize
    full_denom = 2 * full_row_bytes + 2 * _LANE * itemsize

    if min_rows * full_denom <= budget:
        thw = hw
        tr_cap = budget // full_denom
        tr_cap = min(tr_cap, max(_PER_BUFFER_CAP // full_row_bytes, min_rows))
        tr_cap = max((tr_cap // sub) * sub, min_rows)
        if total <= sub:
            return total, thw                      # single full-extent block
        # Prefer >= 2 (even) row blocks so both v7x TensorCores get work.
        nb_target = max(2, pl.cdiv(total, tr_cap))
        if nb_target % 2:
            nb_target += 1
        tr = min(tr_cap, _round_up(pl.cdiv(total, nb_target), sub))
        return tr, thw

    # hw-chunked path (very large images): modest row count, chunk the lane
    # axis and accumulate across chunks in f32 scratch.
    tr = total if total <= sub else min(_round_up(pl.cdiv(total, 2), sub), 256)
    rows_pad = _round_up(tr, sub)
    extras = rows_pad * (2 * _LANE * itemsize + _LANE * 4)   # output + f32 acc
    thw_cap = (budget - extras) // (2 * rows_pad * itemsize)
    thw_cap = min(thw_cap, max(_PER_BUFFER_CAP // (rows_pad * itemsize), _LANE))
    thw = min(max((thw_cap // _LANE) * _LANE, _LANE), padded_hw)
    return tr, thw


def _gap_rows_kernel(x_ref, o_ref, *, inv_hw):
    """Full-width path: x_ref (tr, hw) -> o_ref (tr, 1) row means."""
    s = jnp.sum(x_ref[...], axis=-1, keepdims=True, dtype=jnp.float32)
    o_ref[...] = (s * inv_hw).astype(o_ref.dtype)


def _gap_chunked_kernel(x_ref, o_ref, acc_ref, *, inv_hw, hw, thw, mask_tail):
    """Chunked path: accumulate partial row sums across the hw ('arbitrary')
    grid axis in f32 scratch; finalize on the last chunk."""
    k = pl.program_id(1)

    @pl.when(k == 0)
    def _init():
        acc_ref[...] = jnp.zeros_like(acc_ref)

    x = x_ref[...]
    if mask_tail:
        # Last chunk only partially covers the image: zero the padded lanes so
        # they cannot contaminate the row sums (static flag, mask only emitted
        # when hw % thw != 0).
        lane = jax.lax.broadcasted_iota(jnp.int32, x.shape, 1)
        x = jnp.where(lane < hw - k * thw, x, jnp.zeros_like(x))

    acc_ref[...] += jnp.sum(x, axis=-1, keepdims=True, dtype=jnp.float32)

    @pl.when(k == pl.num_programs(1) - 1)
    def _finalize():
        o_ref[...] = (acc_ref[...] * inv_hw).astype(o_ref.dtype)


def basic_mobilenet_forward(x, *, max_block_rows=None, max_block_cols=None):
    """Eval-mode forward of BasicMobileNet: global average pool -> (N, C).

    `max_block_rows` / `max_block_cols` are optional caps on the tile sizes
    (rows: multiple of the dtype's sublane tile; cols: multiple of 128), used
    for testing the tiled / chunked paths at small shapes.
    """
    n, c, h, w = x.shape
    hw = h * w
    total = n * c
    x2 = x.reshape(total, hw)          # one row per (n, c) channel image

    itemsize = jnp.dtype(x.dtype).itemsize
    sub = _sublane_multiple(x.dtype)
    vmem_limit = _vmem_limit_bytes()

    tr, thw = _choose_tiling(total, hw, itemsize, sub, vmem_limit)
    if max_block_rows is not None:
        tr = min(tr, max((int(max_block_rows) // sub) * sub, min(total, sub)))
    if max_block_cols is not None:
        thw = min(thw, max((int(max_block_cols) // _LANE) * _LANE, _LANE))

    nb = pl.cdiv(total, tr)
    nk = pl.cdiv(hw, thw)
    if nk == 1:
        thw = hw                        # full lane extent -> Mosaic masks pads

    inv_hw = 1.0 / float(hw)
    if nk == 1:
        kernel = functools.partial(_gap_rows_kernel, inv_hw=inv_hw)
        grid = (nb,)
        in_specs = [pl.BlockSpec((tr, thw), lambda i: (i, 0))]
        out_specs = pl.BlockSpec((tr, 1), lambda i: (i, 0))
        scratch_shapes = []
        semantics = ("parallel",)
    else:
        kernel = functools.partial(
            _gap_chunked_kernel, inv_hw=inv_hw, hw=hw, thw=thw,
            mask_tail=(hw % thw) != 0)
        grid = (nb, nk)
        in_specs = [pl.BlockSpec((tr, thw), lambda i, k: (i, k))]
        out_specs = pl.BlockSpec((tr, 1), lambda i, k: (i, 0))
        scratch_shapes = [pltpu.VMEM((tr, 1), jnp.float32)]
        semantics = ("parallel", "arbitrary")

    out = pl.pallas_call(
        kernel,
        out_shape=jax.ShapeDtypeStruct((total, 1), x.dtype),
        grid_spec=pltpu.PrefetchScalarGridSpec(
            num_scalar_prefetch=0,
            grid=grid,
            in_specs=in_specs,
            out_specs=out_specs,
            scratch_shapes=scratch_shapes,
        ),
        compiler_params=pltpu.CompilerParams(
            dimension_semantics=semantics,
            vmem_limit_bytes=int(vmem_limit),
        ),
    )(x2)

    return out.reshape(n, c)


if __name__ == "__main__":
    key = jax.random.PRNGKey(0)
    k0, k1, k2 = jax.random.split(key, 3)

    # 1) Small NCHW input; single full-extent block.
    N, C, H, W = 2, 4, 16, 16
    x = jax.random.normal(k0, (N, C, H, W), dtype=jnp.float32)
    out = jax.block_until_ready(basic_mobilenet_forward(x))
    ref = jnp.mean(x.reshape(N, C, H * W), axis=-1)
    assert out.shape == (N, C)
    assert jnp.allclose(out, ref, atol=1e-5, rtol=1e-5)

    # 2) Non-128-multiple spatial size (14x14) and >= 2 row blocks.
    N2, C2, H2, W2 = 3, 24, 14, 14
    x2 = jax.random.normal(k1, (N2, C2, H2, W2), dtype=jnp.float32)
    out2 = jax.block_until_ready(basic_mobilenet_forward(x2))
    ref2 = jnp.mean(x2.reshape(N2, C2, H2 * W2), axis=-1)
    assert out2.shape == (N2, C2)
    assert jnp.allclose(out2, ref2, atol=1e-5, rtol=1e-5)

    # 3) Same input with tile caps forcing the 2-D grid: row tiling with a
    #    partial tail block, masked hw chunking, and the f32 accumulator.
    out3 = jax.block_until_ready(
        basic_mobilenet_forward(x2, max_block_rows=16, max_block_cols=128))
    assert jnp.allclose(out3, ref2, atol=1e-5, rtol=1e-5)

    # 4) MobileNet-head-like shape (C=160, 7x7 spatial): hw < 128 lane padding.
    N4, C4, H4, W4 = 2, 160, 7, 7
    x4 = jax.random.normal(k2, (N4, C4, H4, W4), dtype=jnp.float32)
    out4 = jax.block_until_ready(basic_mobilenet_forward(x4))
    ref4 = jnp.mean(x4.reshape(N4, C4, H4 * W4), axis=-1)
    assert out4.shape == (N4, C4)
    assert jnp.allclose(out4, ref4, atol=1e-5, rtol=1e-5)

    print("KERNEL_OK")
</pallas_src>

<mosaic_0001>
module attributes {stable_mosaic.version = 11 : i64} {
  func.func @_gap_rows_kernel(%arg0: i32, %arg1: memref<8x256xf32, #tpu.memory_space<vmem>>, %arg2: memref<8x1xf32, #tpu.memory_space<vmem>>) attributes {dimension_semantics = [#tpu.dimension_semantics<parallel>], iteration_bounds = array<i64: 1>, scalar_prefetch = 0 : i64, scratch_operands = 0 : i64, tpu.core_type = #tpu.core_type<tc>, window_params = [{transform_indices = @transform_0, window_bounds = array<i64: 8, 256>}, {transform_indices = @transform_1, window_bounds = array<i64: 8, 1>}]} {
    %c0 = arith.constant 0 : index
    %c0_0 = arith.constant 0 : index
    %0 = vector.load %arg1[%c0, %c0_0] : memref<8x256xf32, #tpu.memory_space<vmem>>, vector<8x256xf32>
    %cst = arith.constant dense<0.000000e+00> : vector<8xf32>
    %1 = vector.multi_reduction <add>, %0, %cst [1] : vector<8x256xf32> to vector<8xf32>
    %2 = vector.shape_cast %1 : vector<8xf32> to vector<8x1xf32>
    %cst_1 = arith.constant 3.906250e-03 : f32
    %3 = vector.broadcast %cst_1 : f32 to vector<8x1xf32>
    %4 = arith.mulf %2, %3 : vector<8x1xf32>
    %c0_2 = arith.constant 0 : index
    %c0_3 = arith.constant 0 : index
    %5 = vector.load %arg2[%c0_2, %c0_3] : memref<8x1xf32, #tpu.memory_space<vmem>>, vector<8x1xf32>
    tpu.vector_store %arg2[%c0_2, %c0_3], %4 {strides = array<i32>} : memref<8x1xf32, #tpu.memory_space<vmem>>, vector<8x1xf32>,
    return
  }
  func.func @transform_0(%arg0: i32) -> (i32, i32) {
    %c0_i32 = arith.constant 0 : i32
    %c0_i32_0 = arith.constant 0 : i32
    return %arg0, %c0_i32 : i32, i32
  }
  func.func @transform_1(%arg0: i32) -> (i32, i32) {
    %c0_i32 = arith.constant 0 : i32
    %c0_i32_0 = arith.constant 0 : i32
    return %arg0, %c0_i32 : i32, i32
  }
}

</mosaic_0001>

<bundles_post_ra>
// kernel: tpu_custom_call.1
= control target key start
LH: loop header
LB: loop body
LE: loop exit
PB: predicated region body
PF: predicated region fallthrough
CT: control target
= control target key end

     0   :  { %6 = vsyncpa [#allocation3], 0  ;;  %s58_s6 = smov [#allocation2]   ;;  %s84_s0 = inlined_call_operand.hbm [shape: f32[8,256], index: 0, kind: input, shape index: {}]   ;;  %s85_s1 = inlined_call_operand.vmem [shape: f32[8,1], index: 1, kind: output, shape index: {}]  }
   0x1   :  { %s13_s7 = sshll.u32 %s58_s6, 4  ;;  %s34_s10 = scalar_lea.hbm %s84_s0, 256  ;;  %s14_s7 = int_to_ptr.vmem [resolvable:$true] %s13_s7 }
   0x2   :  { %p35_p0 = scmp.ne.s32.totalorder %s84_s0, %s34_s10  ;;  %p38_p1 = scmp.lt.u32.totalorder %s34_s10, %s84_s0 }
   0x4   :  { %p40_p2 = pnand %p38_p1, %p35_p0 }
   0x6   :  { %43 = shalt.err (!%p40_p2)
}
   0x7   :  { %s44_s15 = scalar_lea.vmem %s14_s7, 256  ;;  %p49_p4 = scmp.lt.s32.totalorder %s14_s7, %s14_s7 }
   0x8   :  { %p45_p3 = scmp.ne.s32.totalorder %s14_s7, %s44_s15  ;;  %p50_p5 = scmp.lt.s32.totalorder %s44_s15, %s44_s15 }
   0xa   :  { %p51_p6 = por %p50_p5, %p49_p4 }
   0xc   :  { %p52_p7 = pnand %p51_p6, %p45_p3 }
   0xe   :  { %55 = shalt.err (!%p52_p7)
}
   0xf   :  { %16 = dma.hbm_to_vmem [thread:$0]  %s84_s0, 256, %s14_s7, [#allocation3]  }
  0x10   :  { %56 = dma.done.wait [#allocation3], 256  }
  0x11   :  { %57 = vsyncadd [#allocation3], 4294967040  ;;  %v20_v0 = vld [vmem:[#allocation2] sm:$0xff]  ;;  %v21_v1 = vld [vmem:[#allocation2 + $0x8] sm:$0xff]  ;;  %vm26_vm0 = vcmask 7168  }
  0x12   :  { %v22_v2 = vadd.f32 %v21_v1, %v20_v0 }
  0x14   :  { %23 = vadd.xlane.f32.xlu0 %v22_v2 }
  0xa1   :  { %v24_v3 = vpop.xlane.xlu0 %23 }
  0xa2   :  { %v25_v4 = vmul.f32 0.00390625, %v24_v3 }
  0xa4   :  { %27 = vst.msk [vmem:[%s85_s1] sm:$0xff] %vm26_vm0, %v25_v4 }
  0xa5   :  { %32 = vsyncpa [#allocation3], 1 }

</bundles_post_ra>
